<compile_context>
chip_gen: v6e
topology: v6e:2x2x1
jax: 0.10.0
libtpu: 0.0.40
codegen_flags: <defaults>
</compile_context>

<pallas_src>
import jax
import jax.numpy as jnp
from jax import lax
from jax.experimental import pallas as pl
from jax.experimental.pallas import tpu as pltpu


def _sens_expand_kernel(x_ref, c_ref, o_ref):
    """Interleaved complex multiply on (row-of-128-lanes) blocks.

    x_ref: (1, Sb, 128)  image block, lanes alternate (real, imag)
    c_ref: (C, Sb, 128)  coil-sensitivity block, same interleaving
    o_ref: (C, Sb, 128)  output block
    """
    x = x_ref[...].astype(jnp.float32)
    c = c_ref[...].astype(jnp.float32)

    lane = lax.broadcasted_iota(jnp.int32, x.shape, 2)
    even = (lane % 2) == 0                      # (1, Sb, 128): True on real lanes

    def roll_r(a):                              # y[l] = a[l-1]  (within the 128-lane row)
        return pltpu.roll(a, 1, axis=2)

    def roll_l(a):                              # y[l] = a[l+1]
        return pltpu.roll(a, 127, axis=2)

    # Pair-wise duplications / swaps. Wrapped lanes from the circular roll are
    # never selected by the parity mask (row length 128 is even), so the
    # row-edge wraparound is harmless. Computed once on the image block and
    # broadcast over the coil (leading) dim.
    x_r = jnp.where(even, x, roll_r(x))         # [r0, r0, r1, r1, ...]
    x_i = jnp.where(even, roll_l(x), x)         # [i0, i0, i1, i1, ...]
    sign = jnp.where(even, -1.0, 1.0)           # f32
    x_is = sign * x_i

    c_sw = jnp.where(even, roll_l(c), roll_r(c))  # [ci0, cr0, ci1, cr1, ...]

    # even lane: xr*cr - xi*ci ; odd lane: xr*ci + xi*cr
    o_ref[...] = (x_r * c + x_is * c_sw).astype(o_ref.dtype)


def _pick_sb(S, n_coils, itemsize, budget_bytes=24 * 1024 * 1024):
    """Sublane-rows per grid step: multiple of 8, within the VMEM budget.

    Double-buffered VMEM per step ~= 2 * (1 + 2*C) * Sb * 128 * itemsize.
    Keeps >= 2 grid steps when S > 8 so v7x can shard across both TCs.
    """
    per_row = 2 * (1 + 2 * n_coils) * 128 * itemsize
    max_sb = max(budget_bytes // per_row, 8)
    if S <= 8:
        return int(S)                 # tiny problem: single full-extent block
    target = min(max_sb, pl.cdiv(S, 2))
    return int(max((target // 8) * 8, 8))


def sens_expand(x, csm, out_dtype=None):
    """x: [H, W, 2], csm: [C, H, W, 2] -> [C, H, W, 2] (complex_mul, x broadcast over coils)."""
    H, W, two = x.shape
    assert two == 2 and csm.shape[1:] == (H, W, 2)
    C = csm.shape[0]
    L = H * W * 2
    if out_dtype is None:
        out_dtype = jnp.result_type(x.dtype, csm.dtype)

    # Free reshapes of contiguous arrays: the (r,i) interleaving becomes the
    # flattened lane axis; pad to a multiple of 128 only in the rare case
    # H*W % 64 != 0 (one extra HBM copy then).
    Lp = ((L + 127) // 128) * 128
    x_flat = x.reshape(1, L)
    csm_flat = csm.reshape(C, L)
    if Lp != L:
        # TODO(synk): padding copies the inputs once; acceptable for the rare unaligned case.
        x_flat = jnp.pad(x_flat, ((0, 0), (0, Lp - L)))
        csm_flat = jnp.pad(csm_flat, ((0, 0), (0, Lp - L)))

    S = Lp // 128
    x3 = x_flat.reshape(1, S, 128)
    c3 = csm_flat.reshape(C, S, 128)

    itemsize = max(jnp.dtype(x.dtype).itemsize, jnp.dtype(csm.dtype).itemsize)
    Sb = _pick_sb(S, C, itemsize)
    grid = (pl.cdiv(S, Sb),)

    # Double-buffered block footprint -> raise the scoped VMEM limit with headroom
    # (capped well below v7x's 64 MiB physical VMEM per TC).
    footprint = 2 * (1 + 2 * C) * Sb * 128 * itemsize
    vmem_limit = min(max(footprint + footprint // 4 + (2 << 20), 32 << 20), 60 << 20)

    bytes_accessed = (L * jnp.dtype(x.dtype).itemsize
                      + C * L * jnp.dtype(csm.dtype).itemsize
                      + C * L * jnp.dtype(out_dtype).itemsize)

    out3 = pl.pallas_call(
        _sens_expand_kernel,
        out_shape=jax.ShapeDtypeStruct((C, S, 128), out_dtype),
        grid_spec=pltpu.PrefetchScalarGridSpec(
            num_scalar_prefetch=0,
            grid=grid,
            in_specs=[
                pl.BlockSpec((1, Sb, 128), lambda s: (0, s, 0)),   # image slab
                pl.BlockSpec((C, Sb, 128), lambda s: (0, s, 0)),   # all coils, same slab
            ],
            out_specs=pl.BlockSpec((C, Sb, 128), lambda s: (0, s, 0)),
        ),
        compiler_params=pltpu.CompilerParams(
            dimension_semantics=("parallel",),
            vmem_limit_bytes=int(vmem_limit),
        ),
        cost_estimate=pl.CostEstimate(
            flops=6 * C * H * W,
            transcendentals=0,
            bytes_accessed=int(bytes_accessed),
        ),
    )(x3, c3)

    out_flat = out3.reshape(C, Lp)
    if Lp != L:
        out_flat = out_flat[:, :L]
    return out_flat.reshape(C, H, W, 2)


def _complex_mul_ref(x, y):
    # Reference identical to the usual PyTorch complex_mul helper.
    re = x[..., 0] * y[..., 0] - x[..., 1] * y[..., 1]
    im = x[..., 0] * y[..., 1] + x[..., 1] * y[..., 0]
    return jnp.stack([re, im], axis=-1)


if __name__ == "__main__":
    key = jax.random.PRNGKey(0)
    kx, kc = jax.random.split(key)

    C_coils, H, W = 4, 16, 16
    x = jax.random.normal(kx, (H, W, 2), dtype=jnp.float32)
    csm = jax.random.normal(kc, (C_coils, H, W, 2), dtype=jnp.float32)

    out = jax.jit(sens_expand)(x, csm)
    jax.block_until_ready(out)

    ref = _complex_mul_ref(x[None], csm)  # broadcast x over coil dim
    assert out.shape == (C_coils, H, W, 2)
    assert jnp.allclose(out, ref, atol=1e-5, rtol=1e-5)

    print("KERNEL_OK")
</pallas_src>

<mosaic_0001>
module attributes {stable_mosaic.version = 11 : i64} {
  func.func @_sens_expand_kernel(%arg0: i32, %arg1: memref<1x4x128xf32, #tpu.memory_space<vmem>>, %arg2: memref<4x4x128xf32, #tpu.memory_space<vmem>>, %arg3: memref<4x4x128xf32, #tpu.memory_space<vmem>>) attributes {dimension_semantics = [#tpu.dimension_semantics<parallel>], iteration_bounds = array<i64: 1>, scalar_prefetch = 0 : i64, scratch_operands = 0 : i64, tpu.core_type = #tpu.core_type<tc>, window_params = [{transform_indices = @transform_0, window_bounds = array<i64: 1, 4, 128>}, {transform_indices = @transform_1, window_bounds = array<i64: 4, 4, 128>}, {transform_indices = @transform_2, window_bounds = array<i64: 4, 4, 128>}]} {
    %c0 = arith.constant 0 : index
    %c0_0 = arith.constant 0 : index
    %c0_1 = arith.constant 0 : index
    %0 = vector.load %arg1[%c0, %c0_0, %c0_1] : memref<1x4x128xf32, #tpu.memory_space<vmem>>, vector<1x4x128xf32>
    %c0_2 = arith.constant 0 : index
    %c0_3 = arith.constant 0 : index
    %c0_4 = arith.constant 0 : index
    %1 = vector.load %arg2[%c0_2, %c0_3, %c0_4] : memref<4x4x128xf32, #tpu.memory_space<vmem>>, vector<4x4x128xf32>
    %2 = tpu.iota {dimensions = array<i32: 2>} : vector<1x4x128xi32>
    %c2_i32 = arith.constant 2 : i32
    %c0_i32 = arith.constant 0 : i32
    %3 = arith.cmpi eq, %c2_i32, %c0_i32 : i32
    %c1_i32 = arith.constant 1 : i32
    %4 = arith.select %3, %c1_i32, %c2_i32 : i32
    %5 = vector.broadcast %4 : i32 to vector<1x4x128xi32>
    %6 = arith.remsi %2, %5 : vector<1x4x128xi32>
    %c0_i32_5 = arith.constant 0 : i32
    %7 = vector.broadcast %c0_i32_5 : i32 to vector<1x4x128xi32>
    %8 = arith.cmpi ne, %6, %7 : vector<1x4x128xi32>
    %c0_i32_6 = arith.constant 0 : i32
    %9 = vector.broadcast %c0_i32_6 : i32 to vector<1x4x128xi32>
    %10 = arith.cmpi slt, %6, %9 : vector<1x4x128xi32>
    %c0_i32_7 = arith.constant 0 : i32
    %11 = arith.cmpi slt, %4, %c0_i32_7 : i32
    %12 = vector.broadcast %11 : i1 to vector<1x4x128xi1>
    %13 = vector.broadcast %12 : vector<1x4x128xi1> to vector<1x4x128xi1>
    %14 = arith.xori %10, %13 : vector<1x4x128xi1>
    %15 = arith.andi %14, %8 : vector<1x4x128xi1>
    %16 = vector.broadcast %4 : i32 to vector<1x4x128xi32>
    %17 = arith.addi %6, %16 : vector<1x4x128xi32>
    %18 = arith.select %15, %17, %6 : vector<1x4x128xi1>, vector<1x4x128xi32>
    %c0_i32_8 = arith.constant 0 : i32
    %19 = vector.broadcast %c0_i32_8 : i32 to vector<1x4x128xi32>
    %20 = arith.cmpi eq, %18, %19 : vector<1x4x128xi32>
    %c1_i32_9 = arith.constant 1 : i32
    %21 = tpu.dynamic_rotate %0 by %c1_i32_9 dim 2 : vector<1x4x128xf32>, i32 -> vector<1x4x128xf32>
    %22 = arith.select %20, %0, %21 : vector<1x4x128xi1>, vector<1x4x128xf32>
    %c127_i32 = arith.constant 127 : i32
    %23 = tpu.dynamic_rotate %0 by %c127_i32 dim 2 : vector<1x4x128xf32>, i32 -> vector<1x4x128xf32>
    %24 = arith.select %20, %23, %0 : vector<1x4x128xi1>, vector<1x4x128xf32>
    %cst = arith.constant -1.000000e+00 : f32
    %cst_10 = arith.constant 1.000000e+00 : f32
    %25 = vector.broadcast %cst : f32 to vector<1x4x128xf32>
    %26 = vector.broadcast %cst_10 : f32 to vector<1x4x128xf32>
    %27 = arith.select %20, %25, %26 : vector<1x4x128xi1>, vector<1x4x128xf32>
    %28 = arith.mulf %27, %24 : vector<1x4x128xf32>
    %c127_i32_11 = arith.constant 127 : i32
    %29 = tpu.dynamic_rotate %1 by %c127_i32_11 dim 2 : vector<4x4x128xf32>, i32 -> vector<4x4x128xf32>
    %c1_i32_12 = arith.constant 1 : i32
    %30 = tpu.dynamic_rotate %1 by %c1_i32_12 dim 2 : vector<4x4x128xf32>, i32 -> vector<4x4x128xf32>
    %31 = vector.shape_cast %20 : vector<1x4x128xi1> to vector<1x4x128xi1>
    %32 = vector.broadcast %31 : vector<1x4x128xi1> to vector<4x4x128xi1>
    %33 = arith.select %32, %29, %30 : vector<4x4x128xi1>, vector<4x4x128xf32>
    %34 = vector.broadcast %22 : vector<1x4x128xf32> to vector<4x4x128xf32>
    %35 = arith.mulf %34, %1 : vector<4x4x128xf32>
    %36 = vector.broadcast %28 : vector<1x4x128xf32> to vector<4x4x128xf32>
    %37 = arith.mulf %36, %33 : vector<4x4x128xf32>
    %38 = arith.addf %35, %37 : vector<4x4x128xf32>
    %c0_13 = arith.constant 0 : index
    %c0_14 = arith.constant 0 : index
    %c0_15 = arith.constant 0 : index
    %39 = vector.load %arg3[%c0_13, %c0_14, %c0_15] : memref<4x4x128xf32, #tpu.memory_space<vmem>>, vector<4x4x128xf32>
    tpu.vector_store %arg3[%c0_13, %c0_14, %c0_15], %38 {strides = array<i32>} : memref<4x4x128xf32, #tpu.memory_space<vmem>>, vector<4x4x128xf32>,
    return
  }
  func.func @transform_0(%arg0: i32) -> (i32, i32, i32) {
    %c0_i32 = arith.constant 0 : i32
    %c0_i32_0 = arith.constant 0 : i32
    %c0_i32_1 = arith.constant 0 : i32
    return %c0_i32, %arg0, %c0_i32_0 : i32, i32, i32
  }
  func.func @transform_1(%arg0: i32) -> (i32, i32, i32) {
    %c0_i32 = arith.constant 0 : i32
    %c0_i32_0 = arith.constant 0 : i32
    %c0_i32_1 = arith.constant 0 : i32
    return %c0_i32, %arg0, %c0_i32_0 : i32, i32, i32
  }
  func.func @transform_2(%arg0: i32) -> (i32, i32, i32) {
    %c0_i32 = arith.constant 0 : i32
    %c0_i32_0 = arith.constant 0 : i32
    %c0_i32_1 = arith.constant 0 : i32
    return %c0_i32, %arg0, %c0_i32_0 : i32, i32, i32
  }
}

</mosaic_0001>

<bundles_post_ra>
// kernel: sens_expand.1
= control target key start
LH: loop header
LB: loop body
LE: loop exit
PB: predicated region body
PF: predicated region fallthrough
CT: control target
= control target key end

     0   :  { %s84_s13 = smov 127   ;;  %s85_s16 = smov 1   ;;  %v16_v5 = vlaneseq  ;;  %v86_v15 = vmov 1.0   ;;  %s147_s1 = inlined_call_operand.vmem [shape: f32[4,4,128], index: 1, kind: input, shape index: {}]   ;;  %s148_s0 = inlined_call_operand.vmem [shape: f32[1,4,128], index: 0, kind: input, shape index: {}]   ;;  %s149_s2 = inlined_call_operand.vmem [shape: f32[4,4,128], index: 2, kind: output, shape index: {}]  }
   0x1   :  { %v12_v0 = vld [vmem:[%s147_s1] sm:$0xf]  ;;  %v13_v2 = vld [vmem:[%s147_s1 + $0x4] sm:$0xf]  ;;  %v15_v3 = vld [vmem:[%s147_s1 + $0xc] sm:$0xf] }
   0x2   :  { %v11_v1 = vld [vmem:[%s148_s0] sm:$0xf]  ;;  %39 = vrot.lane.b32.xlu1 %v12_v0, %s84_s13  ;;  %v14_v4 = vld [vmem:[%s147_s1 + $0x8] sm:$0xf]  ;;  %v17_v6 = vand.u32 127, %v16_v5 }
   0x3   :  { %34 = vrot.lane.b32.xlu0 %v11_v1, %s84_s13 }
   0x4   :  { %v22_v9 = vand.u32 1, %v17_v6 }
   0x6   :  { %41 = vrot.lane.b32.xlu1 %v13_v2, %s84_s13  ;;  %vm117_vm0 = vcmp.eq.s32.totalorder %v22_v9, 0 }
   0x7   :  { %31 = vrot.lane.b32.xlu0 %v11_v1, %s85_s16  ;;  %v37_v16 = vsel %vm117_vm0, -1.0, %v86_v15 }
   0xa   :  { %45 = vrot.lane.b32.xlu1 %v15_v3, %s84_s13 }
   0xb   :  { %43 = vrot.lane.b32.xlu0 %v14_v4, %s84_s13 }
   0xe   :  { %49 = vrot.lane.b32.xlu1 %v13_v2, %s85_s16 }
   0xf   :  { %47 = vrot.lane.b32.xlu0 %v12_v0, %s85_s16 }
  0x12   :  { %53 = vrot.lane.b32.xlu1 %v15_v3, %s85_s16 }
  0x13   :  { %51 = vrot.lane.b32.xlu0 %v14_v4, %s85_s16 }
  0x74   :  { %v40_v7 = vpop.permute.xlu1 %39 }
  0x75   :  { %v35_v8 = vpop.permute.xlu0 %34 }
  0x76   :  { %v36_v17 = vsel %vm117_vm0, %v35_v8, %v11_v1 }
  0x77   :  { %v38_v19 = vmul.f32 %v37_v16, %v36_v17 }
  0x78   :  { %v42_v10 = vpop.permute.xlu1 %41 }
  0x79   :  { %v32_v11 = vpop.permute.xlu0 %31 }
  0x7a   :  { %v33_v18 = vsel %vm117_vm0, %v11_v1, %v32_v11 }
  0x7b   :  { %v61_v24 = vmul.f32 %v33_v18, %v12_v0  ;;  %v62_v25 = vmul.f32 %v33_v18, %v13_v2  ;;  %v63_v34 = vmul.f32 %v33_v18, %v14_v4  ;;  %v64_v35 = vmul.f32 %v33_v18, %v15_v3 }
  0x7c   :  { %v46_v13 = vpop.permute.xlu1 %45 }
  0x7d   :  { %v44_v14 = vpop.permute.xlu0 %43 }
  0x80   :  { %v50_v20 = vpop.permute.xlu1 %49 }
  0x81   :  { %v48_v21 = vpop.permute.xlu0 %47  ;;  %v58_v22 = vsel %vm117_vm0, %v42_v10, %v50_v20 }
  0x82   :  { %v57_v23 = vsel %vm117_vm0, %v40_v7, %v48_v21  ;;  %v66_v26 = vmul.f32 %v58_v22, %v38_v19 }
  0x83   :  { %v65_v27 = vmul.f32 %v57_v23, %v38_v19 }
  0x84   :  { %v70_v28 = vadd.f32 %v66_v26, %v62_v25  ;;  %v54_v30 = vpop.permute.xlu1 %53 }
  0x85   :  { %v69_v29 = vadd.f32 %v65_v27, %v61_v24  ;;  %v52_v31 = vpop.permute.xlu0 %51  ;;  %v60_v32 = vsel %vm117_vm0, %v46_v13, %v54_v30 }
  0x86   :  { %v59_v33 = vsel %vm117_vm0, %v44_v14, %v52_v31  ;;  %74 = vst [vmem:[%s149_s2 + $0x4] sm:$0xf] %v70_v28  ;;  %v68_v36 = vmul.f32 %v60_v32, %v38_v19 }
  0x87   :  { %73 = vst [vmem:[%s149_s2] sm:$0xf] %v69_v29  ;;  %v67_v37 = vmul.f32 %v59_v33, %v38_v19 }
  0x88   :  { %v72_v38 = vadd.f32 %v68_v36, %v64_v35 }
  0x89   :  { %v71_v39 = vadd.f32 %v67_v37, %v63_v34 }
  0x8a   :  { %76 = vst [vmem:[%s149_s2 + $0xc] sm:$0xf] %v72_v38 }
  0x8b   :  { %75 = vst [vmem:[%s149_s2 + $0x8] sm:$0xf] %v71_v39 }

</bundles_post_ra>
